<compile_context>
chip_gen: v5e
topology: v5e:2x2
jax: 0.10.0
libtpu: 0.0.40
codegen_flags: <defaults>
</compile_context>

<pallas_src>
import jax
import jax.numpy as jnp
from jax.experimental import pallas as pl
from jax.experimental.pallas import tpu as pltpu


def dvn_mlp_kernel(xt_ref, params_ref, b2_ref, o_ref):
    # xt_ref:     (2, TILE_B)  VMEM  -- obs features on sublanes, batch on lanes
    # params_ref: (32, 4)      VMEM  -- packed columns [w1[0,:], w1[1,:], b1, w2]
    # b2_ref:     (1, 1)       SMEM  -- scalar fc2 bias
    # o_ref:      (1, TILE_B)  VMEM  -- lane-dense output slab
    x0 = xt_ref[0:1, :]                    # (1, TILE_B)
    x1 = xt_ref[1:2, :]                    # (1, TILE_B)
    p = params_ref[...]
    w1_0 = p[:, 0:1]                       # (32, 1)
    w1_1 = p[:, 1:2]                       # (32, 1)
    b1 = p[:, 2:3]                         # (32, 1)
    w2 = p[:, 3:4]                         # (32, 1)
    # fc1 with K=2: two broadcast FMAs on the VPU (no MXU push/pop latency).
    h = w1_0 * x0 + w1_1 * x1 + b1         # (32, TILE_B)
    h = jnp.maximum(h, 0.0)
    # fc2 with N=1: elementwise multiply + sublane reduce (no 128-lane XLU reduce).
    y = jnp.sum(h * w2, axis=0, keepdims=True) + b2_ref[0, 0]   # (1, TILE_B)
    o_ref[...] = y.astype(o_ref.dtype)


def _pick_tile_b(B):
    # Lane-dense tiles: x tile = 8*TILE_B bytes, out tile = 4*TILE_B bytes
    # (sublane-padded to 32*TILE_B / 32*TILE_B).  At the 8192 cap the
    # double-buffered working set plus the (32, TILE_B) h temporary is < 3 MiB,
    # well inside every generation's scoped-VMEM default.
    MAX_TILE_B = 8192
    if B <= 256:
        return B                      # single block; block dims == full array dims
    half = -(-B // 2)                 # cdiv(B, 2): >= 2 tiles so both v7x TCs get work
    t = ((half + 127) // 128) * 128   # lane tiles must be multiples of 128
    return min(MAX_TILE_B, t)


def dvn_forward(x, w1, b1, w2, b2, *, tile_b=None):
    """DVN forward: relu(x @ w1 + b1) @ w2 + b2 via a Pallas TPU kernel.

    x: (B, 2) observations.  w1: (2, 32), b1: (1, 32), w2: (32, 1), b2: (1, 1).
    Returns (B, 1) state values.
    """
    B, F = x.shape
    assert F == 2, "DVN expects 2-dim MountainCar observations"
    H = w1.shape[1]
    assert w1.shape == (F, H) and w2.shape == (H, 1)

    if B == 0:
        return jnp.zeros((0, 1), jnp.float32)

    if tile_b is None:
        tile_b = _pick_tile_b(B)
    n_tiles = pl.cdiv(B, tile_b)

    # Batch on the lane axis; output comes back as a lane-dense (1, B) slab.
    # TODO(synk): callers that keep observations stored as (2, B) avoid this
    # transpose copy entirely.
    x_t = x.T                                                    # (2, B)

    # Pack the small resident parameters into one VMEM block (one DMA descriptor):
    # columns are [w1 row 0, w1 row 1, b1, w2], each of length H=32.
    params = jnp.concatenate(
        [w1.T, b1.reshape(H, 1), w2.reshape(H, 1)], axis=1)      # (32, 4)
    b2_s = b2.reshape(1, 1)                                      # scalar, via SMEM

    cost = pl.CostEstimate(
        flops=2 * B * F * H + 2 * B * H,
        transcendentals=0,
        bytes_accessed=4 * (B * F + H * (F + 2) + 1 + B),
    )

    out = pl.pallas_call(
        dvn_mlp_kernel,
        out_shape=jax.ShapeDtypeStruct((1, B), jnp.float32),
        grid=(n_tiles,),
        in_specs=[
            pl.BlockSpec((F, tile_b), lambda i: (0, i)),           # x^T, tiled on lanes
            pl.BlockSpec((H, 4), lambda i: (0, 0)),                # packed params, resident
            pl.BlockSpec(memory_space=pltpu.MemorySpace.SMEM),     # b2 scalar
        ],
        out_specs=pl.BlockSpec((1, tile_b), lambda i: (0, i)),
        compiler_params=pltpu.CompilerParams(
            dimension_semantics=("parallel",)),
        cost_estimate=cost,
    )(x_t, params, b2_s)

    # (1, B) -> (B, 1): contiguous reshape, no copy.
    return out.reshape(B, 1)


def init_params(key):
    # Deterministic init mimicking torch.nn.Linear default (uniform +/- 1/sqrt(fan_in)).
    k1, k2, k3, k4 = jax.random.split(key, 4)
    in1, hid, out = 2, 32, 1
    bound1 = 1.0 / jnp.sqrt(jnp.float32(in1))
    bound2 = 1.0 / jnp.sqrt(jnp.float32(hid))
    w1 = jax.random.uniform(k1, (in1, hid), jnp.float32, -bound1, bound1)
    b1 = jax.random.uniform(k2, (1, hid), jnp.float32, -bound1, bound1)
    w2 = jax.random.uniform(k3, (hid, out), jnp.float32, -bound2, bound2)
    b2 = jax.random.uniform(k4, (1, out), jnp.float32, -bound2, bound2)
    return w1, b1, w2, b2


if __name__ == "__main__":
    key = jax.random.PRNGKey(0)
    pkey, xkey = jax.random.split(key)
    w1, b1, w2, b2 = init_params(pkey)

    def ref_forward(x):
        return jnp.maximum(x @ w1 + b1, 0.0) @ w2 + b2

    # B=8: single tiny block; B=37: single non-multiple-of-8 block;
    # B=300: two "parallel" tiles with a ragged (no-pad) last block.
    for B in (8, 37, 300):
        x = jax.random.normal(jax.random.fold_in(xkey, B), (B, 2), jnp.float32)
        y = dvn_forward(x, w1, b1, w2, b2)
        jax.block_until_ready(y)
        assert y.shape == (B, 1), f"bad shape at B={B}: {y.shape}"
        assert jnp.allclose(y, ref_forward(x), atol=1e-5), f"mismatch vs reference at B={B}"

    print("KERNEL_OK")
</pallas_src>

<mosaic_0001>
module attributes {stable_mosaic.version = 11 : i64} {
  func.func @dvn_mlp_kernel(%arg0: i32, %arg1: memref<2x8xf32, #tpu.memory_space<vmem>>, %arg2: memref<32x4xf32, #tpu.memory_space<vmem>>, %arg3: memref<1x1xf32, #tpu.memory_space<smem>>, %arg4: memref<1x8xf32, #tpu.memory_space<vmem>>) attributes {dimension_semantics = [#tpu.dimension_semantics<parallel>], iteration_bounds = array<i64: 1>, scalar_prefetch = 0 : i64, scratch_operands = 0 : i64, tpu.core_type = #tpu.core_type<tc>, window_params = [{transform_indices = @transform_0, window_bounds = array<i64: 2, 8>}, {pipeline_mode = #tpu.pipeline_mode<synchronous>, transform_indices = @transform_1, window_bounds = array<i64: 32, 4>}, {transform_indices = @transform_2, window_bounds = array<i64: 1, 1>}, {transform_indices = @transform_3, window_bounds = array<i64: 1, 8>}]} {
    %c0 = arith.constant 0 : index
    %c0_0 = arith.constant 0 : index
    %0 = vector.load %arg1[%c0, %c0_0] : memref<2x8xf32, #tpu.memory_space<vmem>>, vector<1x8xf32>
    %c1 = arith.constant 1 : index
    %c0_1 = arith.constant 0 : index
    %1 = vector.load %arg1[%c1, %c0_1] : memref<2x8xf32, #tpu.memory_space<vmem>>, vector<1x8xf32>
    %c0_2 = arith.constant 0 : index
    %c0_3 = arith.constant 0 : index
    %2 = vector.load %arg2[%c0_2, %c0_3] : memref<32x4xf32, #tpu.memory_space<vmem>>, vector<32x4xf32>
    %3 = vector.extract_strided_slice %2 {offsets = [0, 0], sizes = [32, 1], strides = [1, 1]} : vector<32x4xf32> to vector<32x1xf32>
    %4 = vector.extract_strided_slice %2 {offsets = [0, 1], sizes = [32, 1], strides = [1, 1]} : vector<32x4xf32> to vector<32x1xf32>
    %5 = vector.extract_strided_slice %2 {offsets = [0, 2], sizes = [32, 1], strides = [1, 1]} : vector<32x4xf32> to vector<32x1xf32>
    %6 = vector.extract_strided_slice %2 {offsets = [0, 3], sizes = [32, 1], strides = [1, 1]} : vector<32x4xf32> to vector<32x1xf32>
    %7 = vector.broadcast %3 : vector<32x1xf32> to vector<32x8xf32>
    %8 = vector.broadcast %0 : vector<1x8xf32> to vector<32x8xf32>
    %9 = arith.mulf %7, %8 : vector<32x8xf32>
    %10 = vector.broadcast %4 : vector<32x1xf32> to vector<32x8xf32>
    %11 = vector.broadcast %1 : vector<1x8xf32> to vector<32x8xf32>
    %12 = arith.mulf %10, %11 : vector<32x8xf32>
    %13 = arith.addf %9, %12 : vector<32x8xf32>
    %14 = vector.broadcast %5 : vector<32x1xf32> to vector<32x8xf32>
    %15 = arith.addf %13, %14 : vector<32x8xf32>
    %cst = arith.constant 0.000000e+00 : f32
    %16 = vector.broadcast %cst : f32 to vector<32x8xf32>
    %17 = arith.maximumf %15, %16 : vector<32x8xf32>
    %18 = vector.broadcast %6 : vector<32x1xf32> to vector<32x8xf32>
    %19 = arith.mulf %17, %18 : vector<32x8xf32>
    %cst_4 = arith.constant dense<0.000000e+00> : vector<8xf32>
    %20 = vector.multi_reduction <add>, %19, %cst_4 [0] : vector<32x8xf32> to vector<8xf32>
    %21 = vector.shape_cast %20 : vector<8xf32> to vector<1x8xf32>
    %c0_5 = arith.constant 0 : index
    %c0_6 = arith.constant 0 : index
    %22 = memref.load %arg3[%c0_5, %c0_6] : memref<1x1xf32, #tpu.memory_space<smem>>
    %23 = vector.broadcast %22 : f32 to vector<1x8xf32>
    %24 = arith.addf %21, %23 : vector<1x8xf32>
    %c0_7 = arith.constant 0 : index
    %c0_8 = arith.constant 0 : index
    %25 = vector.load %arg4[%c0_7, %c0_8] : memref<1x8xf32, #tpu.memory_space<vmem>>, vector<1x8xf32>
    tpu.vector_store %arg4[%c0_7, %c0_8], %24 {strides = array<i32>} : memref<1x8xf32, #tpu.memory_space<vmem>>, vector<1x8xf32>,
    return
  }
  func.func @transform_0(%arg0: i32) -> (i32, i32) {
    %c0_i32 = arith.constant 0 : i32
    %c0_i32_0 = arith.constant 0 : i32
    return %c0_i32, %arg0 : i32, i32
  }
  func.func @transform_1(%arg0: i32) -> (i32, i32) {
    %c0_i32 = arith.constant 0 : i32
    %c0_i32_0 = arith.constant 0 : i32
    %c0_i32_1 = arith.constant 0 : i32
    return %c0_i32, %c0_i32_0 : i32, i32
  }
  func.func @transform_2(%arg0: i32) -> (i32, i32) {
    %c0_i32 = arith.constant 0 : i32
    %c0_i32_0 = arith.constant 0 : i32
    %c0_i32_1 = arith.constant 0 : i32
    return %c0_i32, %c0_i32_0 : i32, i32
  }
  func.func @transform_3(%arg0: i32) -> (i32, i32) {
    %c0_i32 = arith.constant 0 : i32
    %c0_i32_0 = arith.constant 0 : i32
    return %c0_i32, %arg0 : i32, i32
  }
}

</mosaic_0001>

<bundles_post_ra>
// kernel: tpu_custom_call.1
= control target key start
LH: loop header
LB: loop body
LE: loop exit
PB: predicated region body
PF: predicated region fallthrough
CT: control target
= control target key end

     0   :  { %v195_v2 = vmov 0   ;;  %s244_s0 = inlined_call_operand.vmem [shape: f32[2,8], index: 0, kind: input, shape index: {}]   ;;  %s245_s1 = inlined_call_operand.vmem [shape: f32[32,4], index: 1, kind: input, shape index: {}]   ;;  %s246_s2 = inlined_call_operand.<no memory space> [shape: f32[1,1], index: 2, kind: input, shape index: {}]   ;;  %s247_s3 = inlined_call_operand.hbm [shape: f32[1,8], index: 3, kind: output, shape index: {}]  }
   0x1   :  { %v20_v0 = vld [vmem:[%s245_s1 + $0x10] sm:$0xff]  ;;  %v18_v1 = vld [vmem:[%s245_s1] sm:$0xff]  ;;  %157 = vset.pattern.permute.xlu1 %v195_v2  ;;  %156 = vset.pattern.permute.xlu0 %v195_v2 }
   0x2   :  { %34 = vperm.xlu1 %157, %v20_v0   ;;  %24 = vperm.xlu0 %156, %v18_v1  }
   0x3   :  { %9 = vsyncpa [#allocation4], 0  ;;  %v196_v3 = vmov 1   ;;  %v21_v4 = vld [vmem:[%s245_s1 + $0x18] sm:$0xff]  ;;  %v19_v5 = vld [vmem:[%s245_s1 + $0x8] sm:$0xff]  ;;  %v197_v6 = vmov 2   ;;  %v131_v62 = vstv %s246_s2 }
   0x4   :  { %158 = vset.pattern.permute.xlu2 %v196_v3  ;;  %v198_v7 = vmov 3   ;;  %v167_v16 = vld [vmem:[%s244_s0 + $0x1] ss:$0 sm:$0xff]  ;;  %v168_v18 = vld [vmem:[%s244_s0] ss:$0 sm:$0xff]  ;;  %vm116_vm0 = vcmask 64512  }
   0x5   :  { %48 = vperm.xlu2 %158, %v18_v1   ;;  %s199_s24 = smov [#allocation3]   ;;  %s142_s28 = sshll.u32 %s247_s3, 4  ;;  %vm133_vm1 = vcmask 57344   ;;  %s143_s28 = int_to_ptr.hbm [resolvable:$true] %s142_s28 }
   0x6   :  { %s140_s25 = sshll.u32 %s199_s24, 4  ;;  %s141_s25 = int_to_ptr.vmem [resolvable:$true] %s140_s25 }
   0xa   :  { %39 = vperm.xlu1 %157, %v21_v4   ;;  %29 = vperm.xlu0 %156, %v19_v5  }
   0xd   :  { %52 = vperm.xlu2 %158, %v19_v5  }
  0x12   :  { %160 = vset.pattern.permute.xlu1 %v196_v3  ;;  %159 = vset.pattern.permute.xlu0 %v196_v3 }
  0x13   :  { %60 = vperm.xlu1 %160, %v21_v4   ;;  %56 = vperm.xlu0 %159, %v20_v0  }
  0x15   :  { %161 = vset.pattern.permute.xlu2 %v197_v6 }
  0x16   :  { %73 = vperm.xlu2 %161, %v18_v1  }
  0x1b   :  { %162 = vset.pattern.permute.xlu1 %v197_v6  ;;  %163 = vset.pattern.permute.xlu0 %v197_v6 }
  0x1c   :  { %77 = vperm.xlu1 %162, %v19_v5   ;;  %85 = vperm.xlu0 %163, %v21_v4  }
  0x1e   :  { %81 = vperm.xlu2 %161, %v20_v0  }
  0x24   :  { %164 = vset.pattern.permute.xlu1 %v198_v7  ;;  %166 = vset.pattern.permute.xlu0 %v198_v7 }
  0x25   :  { %97 = vperm.xlu1 %164, %v18_v1  }
  0x26   :  { %165 = vset.pattern.permute.xlu2 %v198_v7 }
  0x27   :  { %101 = vperm.xlu2 %165, %v19_v5  }
  0x2d   :  { %105 = vperm.xlu1 %164, %v20_v0  }
  0x2f   :  { %109 = vperm.xlu2 %165, %v21_v4  }
  0x5f   :  { %v49_v8 = vpop.permute.xlu2 %48 }
  0x60   :  { %v64_v20 = vmul.f32 %v167_v16, %v49_v8 }
  0x67   :  { %v53_v10 = vpop.permute.xlu2 %52 }
  0x68   :  { %v65_v24 = vmul.f32 %v167_v16, %v53_v10 }
  0x70   :  { %v74_v13 = vpop.permute.xlu2 %73 }
  0x74   :  { %v35_v9 = vpop.permute.xlu1 %34  ;;  %v25_v11 = vpop.permute.xlu0 %24 }
  0x75   :  { %v43_v21 = vmul.f32 %v168_v18, %v25_v11  ;;  %v45_v30 = vmul.f32 %v168_v18, %v35_v9 }
  0x77   :  { %v68_v25 = vadd.f32 %v64_v20, %v43_v21 }
  0x78   :  { %v82_v17 = vpop.permute.xlu2 %81 }
  0x79   :  { %v88_v31 = vadd.f32 %v74_v13, %v68_v25 }
  0x7b   :  { %v92_v38 = vmax.f32 %v88_v31, 0.0 }
  0x7c   :  { %v40_v12 = vpop.permute.xlu1 %39  ;;  %v30_v14 = vpop.permute.xlu0 %29 }
  0x7d   :  { %v44_v22 = vmul.f32 %v168_v18, %v30_v14  ;;  %v46_v32 = vmul.f32 %v168_v18, %v40_v12 }
  0x7f   :  { %v69_v28 = vadd.f32 %v65_v24, %v44_v22 }
  0x81   :  { %v102_v29 = vpop.permute.xlu2 %101 }
  0x85   :  { %v61_v15 = vpop.permute.xlu1 %60  ;;  %v57_v19 = vpop.permute.xlu0 %56 }
  0x86   :  { %v67_v26 = vmul.f32 %v167_v16, %v61_v15  ;;  %v66_v27 = vmul.f32 %v167_v16, %v57_v19 }
  0x88   :  { %v70_v35 = vadd.f32 %v66_v27, %v45_v30  ;;  %v71_v36 = vadd.f32 %v67_v26, %v46_v32 }
  0x89   :  { %v110_v45 = vpop.permute.xlu2 %109 }
  0x8a   :  { %v90_v42 = vadd.f32 %v82_v17, %v70_v35 }
  0x8c   :  { %v94_v47 = vmax.f32 %v90_v42, 0.0 }
  0x8e   :  { %v78_v23 = vpop.permute.xlu1 %77  ;;  %v86_v34 = vpop.permute.xlu0 %85 }
  0x8f   :  { %v89_v33 = vadd.f32 %v78_v23, %v69_v28  ;;  %v91_v40 = vadd.f32 %v86_v34, %v71_v36 }
  0x91   :  { %v93_v39 = vmax.f32 %v89_v33, 0.0  ;;  %v95_v44 = vmax.f32 %v91_v40, 0.0 }
  0x93   :  { %v113_v43 = vmul.f32 %v102_v29, %v93_v39  ;;  %v115_v49 = vmul.f32 %v110_v45, %v95_v44 }
  0x95   :  { %v118_v50 = vsel %vm116_vm0, %v113_v43, 0.0  ;;  %v122_v55 = vsel %vm116_vm0, %v115_v49, 0.0 }
  0x97   :  { %v98_v37 = vpop.permute.xlu1 %97 }
  0x98   :  { %v112_v41 = vmul.f32 %v98_v37, %v92_v38 }
  0x9a   :  { %v117_v46 = vsel %vm116_vm0, %v112_v41, 0.0 }
  0x9b   :  { %v119_v52 = vadd.f32 %v118_v50, %v117_v46 }
  0x9f   :  { %v106_v48 = vpop.permute.xlu1 %105 }
  0xa0   :  { %v114_v51 = vmul.f32 %v106_v48, %v94_v47 }
  0xa2   :  { %v120_v53 = vsel %vm116_vm0, %v114_v51, 0.0 }
  0xa3   :  { %v121_v54 = vadd.f32 %v120_v53, %v119_v52 }
  0xa5   :  { %v123_v56 = vadd.f32 %v122_v55, %v121_v54 }
  0xa7   :  { %v124_v57 = vrot.slane %v123_v56, 4 }
  0xa9   :  { %v125_v58 = vadd.f32 %v124_v57, %v123_v56 }
  0xab   :  { %v126_v59 = vrot.slane %v125_v58, 2 }
  0xad   :  { %v127_v60 = vadd.f32 %v126_v59, %v125_v58 }
  0xaf   :  { %v128_v61 = vrot.slane %v127_v60, 1 }
  0xb1   :  { %v129_v63 = vadd.f32 %v128_v61, %v127_v60 }
  0xb3   :  { %v132_v0 = vadd.f32 %v131_v62, %v129_v63 }
  0xb5   :  { %134 = vst.msk [vmem:[#allocation3] sm:$0x1] %vm133_vm1, %v132_v0 }
  0xb6   :  { %145 = dma.vmem_to_hbm [thread:$0]  %s141_s25, 16, %s143_s28, [#allocation4]  }
  0xb7   :  { %193 = dma.done.wait [#allocation4], 16  }
  0xb8   :  { %194 = vsyncadd [#allocation4], 4294967280 }
  0xb9   :  { %150 = vsyncpa [#allocation4], 1 }

</bundles_post_ra>
